<compile_context>
chip_gen: v5e
topology: v5e:2x2
jax: 0.10.0
libtpu: 0.0.40
codegen_flags: <defaults>
</compile_context>

<pallas_src>
import functools

import numpy as np
import jax
import jax.numpy as jnp
from jax import lax
from jax.experimental import pallas as pl
from jax.experimental.pallas import tpu as pltpu


# ----------------------------------------------------------------------------
# Positional encoding (same math as the PyTorch getPositionEncoding helper),
# vectorised and cached on (seq_len, d, n).
# ----------------------------------------------------------------------------
@functools.lru_cache(maxsize=None)
def _position_encoding_np(seq_len, d, n=10000):
    k = np.arange(seq_len, dtype=np.float64)[:, None]
    i = np.arange(d // 2, dtype=np.float64)[None, :]
    denom = np.power(float(n), 2.0 * i / d)
    P = np.zeros((seq_len, d), dtype=np.float32)
    P[:, 0::2] = np.sin(k / denom)
    P[:, 1::2] = np.cos(k / denom)
    return P


def get_position_encoding(seq_len, d, n=10000):
    return jnp.asarray(_position_encoding_np(seq_len, d, n))


# ----------------------------------------------------------------------------
# One-time parameter packing: everything constant (PE, weights, biases, mask)
# goes into ONE lane-dense f32 buffer.  All layouts are 2-D; section row
# starts are 8-aligned so in-kernel static `ref` slices stay tile-friendly.
# ----------------------------------------------------------------------------
def pack_params(params, num_heads, seq_len):
    D = int(params["wq"].shape[0])
    H = int(num_heads)
    hd = D // H
    F = int(params["w1"].shape[0])
    S = int(seq_len)
    HS = H * S
    scale = 1.0 / float(np.sqrt(hd))

    # PyTorch Linear: y = x @ W.T + b  (W is (out, in)).  Store W.T = (in, out).
    wqkv = np.concatenate(
        [np.asarray(params["wq"]).T * scale,     # 1/sqrt(hd) folded into Q
         np.asarray(params["wk"]).T,
         np.asarray(params["wv"]).T], axis=1).astype(np.float32)         # (D, 3D)
    bqkv = np.concatenate(
        [np.asarray(params["bq"]) * scale,
         np.asarray(params["bk"]),
         np.asarray(params["bv"])]).astype(np.float32)                   # (3D,)
    w1 = np.asarray(params["w1"]).T.astype(np.float32)                   # (D, F)
    b1 = np.asarray(params["b1"]).astype(np.float32)                     # (F,)
    w2t = np.asarray(params["w2"]).T.astype(np.float32)                  # (F, D)
    b2 = np.asarray(params["b2"]).astype(np.float32)                     # (D,)

    pe = _position_encoding_np(S, D)                                     # (S, D)

    # Combined block-diagonal (same-head) + causal additive mask on the
    # heads-folded (H*S, H*S) score matrix.  Cross-head entries MUST be -1e9
    # so the 32-wide softmax only normalises over this head's keys.
    r = np.arange(HS)
    same_head = (r[:, None] // S) == (r[None, :] // S)
    causal = (r[None, :] % S) <= (r[:, None] % S)
    mask = np.where(same_head & causal, 0.0, -1e9).astype(np.float32)    # (HS, HS)

    W = max(3 * D, F + D, HS)

    def rup(x):
        return (x + 7) // 8 * 8

    pe_r = 0
    wqkv_r = pe_r + rup(S)
    bias_r = wqkv_r + rup(D)
    w1_r = bias_r + 8
    w2_r = w1_r + rup(D)
    mask_r = w2_r + rup(F)
    total = mask_r + rup(HS)

    consts = np.zeros((total, W), dtype=np.float32)
    consts[pe_r:pe_r + S, :D] = pe
    consts[wqkv_r:wqkv_r + D, :3 * D] = wqkv
    consts[bias_r, :3 * D] = bqkv
    consts[bias_r + 1, :F] = b1
    consts[bias_r + 1, F:F + D] = b2
    consts[w1_r:w1_r + D, :F] = w1
    consts[w2_r:w2_r + F, :D] = w2t
    consts[mask_r:mask_r + HS, :HS] = mask

    layout = dict(S=S, D=D, H=H, hd=hd, F=F,
                  pe_r=pe_r, wqkv_r=wqkv_r, bias_r=bias_r,
                  w1_r=w1_r, w2_r=w2_r, mask_r=mask_r)
    return jnp.asarray(consts), layout


# ----------------------------------------------------------------------------
# Pallas kernel: full Encoder forward (5 matmuls, 1 store)
# ----------------------------------------------------------------------------
def encoder_kernel(emb_ref, consts_ref, out_ref, *, layout):
    S, D, H, hd, F = (layout["S"], layout["D"], layout["H"],
                      layout["hd"], layout["F"])
    pe_r, wqkv_r, bias_r = layout["pe_r"], layout["wqkv_r"], layout["bias_r"]
    w1_r, w2_r, mask_r = layout["w1_r"], layout["w2_r"], layout["mask_r"]
    HS = H * S

    # emb + sinusoidal positional encoding
    x = emb_ref[...] + consts_ref[pe_r:pe_r + S, 0:D]                     # (S, D)

    # Fused QKV projection: ONE lane-dense (S, D) x (D, 3D) matmul + bias row.
    wqkv = consts_ref[wqkv_r:wqkv_r + D, 0:3 * D]                         # (D, 3D)
    bqkv = consts_ref[bias_r:bias_r + 1, 0:3 * D]                         # (1, 3D)
    qkv = jnp.dot(x, wqkv, preferred_element_type=jnp.float32) + bqkv     # (S, 3D)

    # Fold heads into sublanes: (S, 3*H*hd) -> (3*H*S, hd) via static lane
    # slices + one sublane concat (all boundaries 8-aligned).
    qkv_h = jnp.concatenate(
        [qkv[:, i * hd:(i + 1) * hd] for i in range(3 * H)], axis=0)      # (3HS, hd)
    q = qkv_h[0:HS]                 # already scaled by 1/sqrt(hd)
    k = qkv_h[HS:2 * HS]
    v = qkv_h[2 * HS:3 * HS]

    # Attention scores: ONE (HS, hd) x (hd, HS) matmul (contraction on last
    # dims of both operands, no in-kernel transpose).
    scores = lax.dot_general(q, k, (((1,), (1,)), ((), ())),
                             preferred_element_type=jnp.float32)          # (HS, HS)

    # Precomputed combined block-diagonal + causal additive mask.
    scores = scores + consts_ref[mask_r:mask_r + HS, 0:HS]

    # Softmax over the folded 32-wide row (cross-head entries underflow to 0).
    scores = scores - jnp.max(scores, axis=-1, keepdims=True)
    p = jnp.exp(scores)
    p = p / jnp.sum(p, axis=-1, keepdims=True)                            # exact

    # Attention output: ONE (HS, HS) x (HS, hd) matmul.
    attn = jnp.dot(p, v, preferred_element_type=jnp.float32)              # (HS, hd)

    # Unfold heads: (H*S, hd) -> (S, H*hd) = (S, D) via static slices + concat.
    attn2 = jnp.concatenate(
        [attn[h * S:(h + 1) * S, :] for h in range(H)], axis=1)           # (S, D)

    # Feed-forward: two plain matmuls.
    w1 = consts_ref[w1_r:w1_r + D, 0:F]                                   # (D, F)
    b1 = consts_ref[bias_r + 1:bias_r + 2, 0:F]                           # (1, F)
    h1 = jnp.maximum(
        jnp.dot(attn2, w1, preferred_element_type=jnp.float32) + b1,
        jnp.float32(0.0))                                                 # (S, F)

    w2t = consts_ref[w2_r:w2_r + F, 0:D]                                  # (F, D)
    b2 = consts_ref[bias_r + 1:bias_r + 2, F:F + D]                       # (1, D)
    out_ref[...] = jnp.dot(h1, w2t, preferred_element_type=jnp.float32) + b2


# ----------------------------------------------------------------------------
# Wrapper
# ----------------------------------------------------------------------------
def encoder_forward(emb, consts, layout):
    S, D = emb.shape
    H, hd, F = layout["H"], layout["hd"], layout["F"]
    HS = H * S

    kernel = functools.partial(encoder_kernel, layout=layout)
    vmem = pl.BlockSpec(memory_space=pltpu.MemorySpace.VMEM)

    flops = int(2 * S * D * 3 * D          # fused QKV projection
                + 2 * HS * hd * HS         # scores
                + 2 * HS * HS * hd         # p @ v
                + 2 * S * D * F            # FF1
                + 2 * S * F * D)           # FF2
    transcendentals = int(HS * HS)
    bytes_accessed = int((emb.size + consts.size + S * D) * 4)

    return pl.pallas_call(
        kernel,
        out_shape=jax.ShapeDtypeStruct((S, D), jnp.float32),
        in_specs=[vmem, vmem],
        out_specs=vmem,
        cost_estimate=pl.CostEstimate(
            flops=flops, transcendentals=transcendentals,
            bytes_accessed=bytes_accessed),
    )(emb, consts)


# ----------------------------------------------------------------------------
# Pure-JAX reference (mirrors the PyTorch forward) for correctness checking
# ----------------------------------------------------------------------------
def encoder_reference(emb, params, *, num_heads):
    seq_len, emb_dim = emb.shape
    head_dim = emb_dim // num_heads
    x = emb + get_position_encoding(seq_len, emb_dim)

    def linear(x, w, b):
        return x @ w.T + b

    q = linear(x, params["wq"], params["bq"]).reshape(
        seq_len, num_heads, head_dim).transpose(1, 0, 2)
    k = linear(x, params["wk"], params["bk"]).reshape(
        seq_len, num_heads, head_dim).transpose(1, 0, 2)
    v = linear(x, params["wv"], params["bv"]).reshape(
        seq_len, num_heads, head_dim).transpose(1, 0, 2)

    sim = jnp.einsum("hqd,hkd->hqk", q, k) / (head_dim ** 0.5)
    mask = jnp.triu(jnp.ones_like(sim), k=1) * -1e9
    soft = jax.nn.softmax(sim + mask, axis=-1)
    attn = jnp.einsum("hqk,hkd->hqd", soft, v).transpose(1, 0, 2).reshape(seq_len, -1)

    h1 = jnp.maximum(linear(attn, params["w1"], params["b1"]), 0.0)
    return linear(h1, params["w2"], params["b2"])


# ----------------------------------------------------------------------------
# Main
# ----------------------------------------------------------------------------
if __name__ == "__main__":
    seq_len = 8
    emb_dim = 32
    num_heads = 4
    hidden_dim_ff = 64

    key = jax.random.PRNGKey(0)
    keys = jax.random.split(key, 12)

    def init(k, shape, scale=0.1):
        return scale * jax.random.normal(k, shape, dtype=jnp.float32)

    # PyTorch Linear weight layout: (out_features, in_features)
    params = {
        "wq": init(keys[0], (emb_dim, emb_dim)),
        "bq": init(keys[1], (emb_dim,)),
        "wk": init(keys[2], (emb_dim, emb_dim)),
        "bk": init(keys[3], (emb_dim,)),
        "wv": init(keys[4], (emb_dim, emb_dim)),
        "bv": init(keys[5], (emb_dim,)),
        "w1": init(keys[6], (hidden_dim_ff, emb_dim)),
        "b1": init(keys[7], (hidden_dim_ff,)),
        "w2": init(keys[8], (emb_dim, hidden_dim_ff)),
        "b2": init(keys[9], (emb_dim,)),
        # NOTE: attn_embedding_bias exists in __init__ but is unused in forward.
    }

    emb = jax.random.normal(keys[10], (seq_len, emb_dim), dtype=jnp.float32)

    consts, layout = pack_params(params, num_heads, seq_len)   # one-time packing
    out = encoder_forward(emb, consts, layout)
    out = jax.block_until_ready(out)

    ref = encoder_reference(emb, params, num_heads=num_heads)
    assert out.shape == (seq_len, emb_dim)
    # Exact softmax division (no approx reciprocal) -> tight tolerance again.
    np.testing.assert_allclose(np.asarray(out), np.asarray(ref),
                               rtol=5e-4, atol=1e-5)

    print("KERNEL_OK")
</pallas_src>

<mosaic_0001>
module attributes {stable_mosaic.version = 11 : i64} {
  func.func @encoder_kernel(%arg0: memref<8x32xf32, #tpu.memory_space<vmem>>, %arg1: memref<176x96xf32, #tpu.memory_space<vmem>>, %arg2: memref<8x32xf32, #tpu.memory_space<vmem>>) attributes {dimension_semantics = [], scalar_prefetch = 0 : i64, scratch_operands = 0 : i64, tpu.core_type = #tpu.core_type<tc>} {
    %c0 = arith.constant 0 : index
    %c0_0 = arith.constant 0 : index
    %0 = vector.load %arg0[%c0, %c0_0] : memref<8x32xf32, #tpu.memory_space<vmem>>, vector<8x32xf32>
    %c0_1 = arith.constant 0 : index
    %c0_2 = arith.constant 0 : index
    %1 = vector.load %arg1[%c0_1, %c0_2] : memref<176x96xf32, #tpu.memory_space<vmem>>, vector<8x32xf32>
    %2 = arith.addf %0, %1 : vector<8x32xf32>
    %c8 = arith.constant 8 : index
    %c0_3 = arith.constant 0 : index
    %3 = vector.load %arg1[%c8, %c0_3] : memref<176x96xf32, #tpu.memory_space<vmem>>, vector<32x96xf32>
    %c40 = arith.constant 40 : index
    %c0_4 = arith.constant 0 : index
    %4 = vector.load %arg1[%c40, %c0_4] : memref<176x96xf32, #tpu.memory_space<vmem>>, vector<1x96xf32>
    %cst = arith.constant dense<0.000000e+00> : vector<8x96xf32>
    %5 = tpu.matmul %2, %3, %cst {dimension_numbers = #tpu.dot_dimension_numbers<[1], [0], [0], [1], [0, 0, 1, 1], [], []>} : vector<8x32xf32>, vector<32x96xf32>, vector<8x96xf32> -> vector<8x96xf32>
    %6 = vector.broadcast %4 : vector<1x96xf32> to vector<8x96xf32>
    %7 = arith.addf %5, %6 : vector<8x96xf32>
    %8 = vector.extract_strided_slice %7 {offsets = [0, 0], sizes = [8, 8], strides = [1, 1]} : vector<8x96xf32> to vector<8x8xf32>
    %9 = vector.extract_strided_slice %7 {offsets = [0, 8], sizes = [8, 8], strides = [1, 1]} : vector<8x96xf32> to vector<8x8xf32>
    %10 = vector.extract_strided_slice %7 {offsets = [0, 16], sizes = [8, 8], strides = [1, 1]} : vector<8x96xf32> to vector<8x8xf32>
    %11 = vector.extract_strided_slice %7 {offsets = [0, 24], sizes = [8, 8], strides = [1, 1]} : vector<8x96xf32> to vector<8x8xf32>
    %12 = vector.extract_strided_slice %7 {offsets = [0, 32], sizes = [8, 8], strides = [1, 1]} : vector<8x96xf32> to vector<8x8xf32>
    %13 = vector.extract_strided_slice %7 {offsets = [0, 40], sizes = [8, 8], strides = [1, 1]} : vector<8x96xf32> to vector<8x8xf32>
    %14 = vector.extract_strided_slice %7 {offsets = [0, 48], sizes = [8, 8], strides = [1, 1]} : vector<8x96xf32> to vector<8x8xf32>
    %15 = vector.extract_strided_slice %7 {offsets = [0, 56], sizes = [8, 8], strides = [1, 1]} : vector<8x96xf32> to vector<8x8xf32>
    %16 = vector.extract_strided_slice %7 {offsets = [0, 64], sizes = [8, 8], strides = [1, 1]} : vector<8x96xf32> to vector<8x8xf32>
    %17 = vector.extract_strided_slice %7 {offsets = [0, 72], sizes = [8, 8], strides = [1, 1]} : vector<8x96xf32> to vector<8x8xf32>
    %18 = vector.extract_strided_slice %7 {offsets = [0, 80], sizes = [8, 8], strides = [1, 1]} : vector<8x96xf32> to vector<8x8xf32>
    %19 = vector.extract_strided_slice %7 {offsets = [0, 88], sizes = [8, 8], strides = [1, 1]} : vector<8x96xf32> to vector<8x8xf32>
    %20 = tpu.concatenate %8, %9, %10, %11, %12, %13, %14, %15, %16, %17, %18, %19 in 0 : vector<8x8xf32>, vector<8x8xf32>, vector<8x8xf32>, vector<8x8xf32>, vector<8x8xf32>, vector<8x8xf32>, vector<8x8xf32>, vector<8x8xf32>, vector<8x8xf32>, vector<8x8xf32>, vector<8x8xf32>, vector<8x8xf32> -> vector<96x8xf32>
    %21 = vector.extract_strided_slice %20 {offsets = [0, 0], sizes = [32, 8], strides = [1, 1]} : vector<96x8xf32> to vector<32x8xf32>
    %22 = vector.extract_strided_slice %20 {offsets = [32, 0], sizes = [32, 8], strides = [1, 1]} : vector<96x8xf32> to vector<32x8xf32>
    %23 = vector.extract_strided_slice %20 {offsets = [64, 0], sizes = [32, 8], strides = [1, 1]} : vector<96x8xf32> to vector<32x8xf32>
    %cst_5 = arith.constant dense<0.000000e+00> : vector<32x32xf32>
    %24 = tpu.matmul %21, %22, %cst_5 {dimension_numbers = #tpu.dot_dimension_numbers<[1], [1], [0], [0], [0, 0, 1, 0], [], []>} : vector<32x8xf32>, vector<32x8xf32>, vector<32x32xf32> -> vector<32x32xf32>
    %c144 = arith.constant 144 : index
    %c0_6 = arith.constant 0 : index
    %25 = vector.load %arg1[%c144, %c0_6] : memref<176x96xf32, #tpu.memory_space<vmem>>, vector<32x32xf32>
    %26 = arith.addf %24, %25 : vector<32x32xf32>
    %cst_7 = arith.constant dense<0xFF800000> : vector<32xf32>
    %27 = vector.multi_reduction <maximumf>, %26, %cst_7 [1] : vector<32x32xf32> to vector<32xf32>
    %28 = vector.shape_cast %27 : vector<32xf32> to vector<32x1xf32>
    %29 = vector.broadcast %28 : vector<32x1xf32> to vector<32x32xf32>
    %30 = arith.subf %26, %29 : vector<32x32xf32>
    %31 = math.exp %30 : vector<32x32xf32>
    %cst_8 = arith.constant dense<0.000000e+00> : vector<32xf32>
    %32 = vector.multi_reduction <add>, %31, %cst_8 [1] : vector<32x32xf32> to vector<32xf32>
    %33 = vector.shape_cast %32 : vector<32xf32> to vector<32x1xf32>
    %34 = vector.broadcast %33 : vector<32x1xf32> to vector<32x32xf32>
    %35 = arith.divf %31, %34 : vector<32x32xf32>
    %cst_9 = arith.constant dense<0.000000e+00> : vector<32x8xf32>
    %36 = tpu.matmul %35, %23, %cst_9 {dimension_numbers = #tpu.dot_dimension_numbers<[1], [0], [0], [1], [0, 0, 1, 1], [], []>} : vector<32x32xf32>, vector<32x8xf32>, vector<32x8xf32> -> vector<32x8xf32>
    %37 = vector.extract_strided_slice %36 {offsets = [0, 0], sizes = [8, 8], strides = [1, 1]} : vector<32x8xf32> to vector<8x8xf32>
    %38 = vector.extract_strided_slice %36 {offsets = [8, 0], sizes = [8, 8], strides = [1, 1]} : vector<32x8xf32> to vector<8x8xf32>
    %39 = vector.extract_strided_slice %36 {offsets = [16, 0], sizes = [8, 8], strides = [1, 1]} : vector<32x8xf32> to vector<8x8xf32>
    %40 = vector.extract_strided_slice %36 {offsets = [24, 0], sizes = [8, 8], strides = [1, 1]} : vector<32x8xf32> to vector<8x8xf32>
    %41 = tpu.concatenate %37, %38, %39, %40 in 1 : vector<8x8xf32>, vector<8x8xf32>, vector<8x8xf32>, vector<8x8xf32> -> vector<8x32xf32>
    %c48 = arith.constant 48 : index
    %c0_10 = arith.constant 0 : index
    %42 = vector.load %arg1[%c48, %c0_10] : memref<176x96xf32, #tpu.memory_space<vmem>>, vector<32x64xf32>
    %c41 = arith.constant 41 : index
    %c0_11 = arith.constant 0 : index
    %43 = vector.load %arg1[%c41, %c0_11] : memref<176x96xf32, #tpu.memory_space<vmem>>, vector<1x64xf32>
    %cst_12 = arith.constant dense<0.000000e+00> : vector<8x64xf32>
    %44 = tpu.matmul %41, %42, %cst_12 {dimension_numbers = #tpu.dot_dimension_numbers<[1], [0], [0], [1], [0, 0, 1, 1], [], []>} : vector<8x32xf32>, vector<32x64xf32>, vector<8x64xf32> -> vector<8x64xf32>
    %45 = vector.broadcast %43 : vector<1x64xf32> to vector<8x64xf32>
    %46 = arith.addf %44, %45 : vector<8x64xf32>
    %cst_13 = arith.constant 0.000000e+00 : f32
    %47 = vector.broadcast %cst_13 : f32 to vector<8x64xf32>
    %48 = arith.maximumf %46, %47 : vector<8x64xf32>
    %c80 = arith.constant 80 : index
    %c0_14 = arith.constant 0 : index
    %49 = vector.load %arg1[%c80, %c0_14] : memref<176x96xf32, #tpu.memory_space<vmem>>, vector<64x32xf32>
    %c41_15 = arith.constant 41 : index
    %c64 = arith.constant 64 : index
    %50 = vector.load %arg1[%c41_15, %c64] : memref<176x96xf32, #tpu.memory_space<vmem>>, vector<1x32xf32>
    %cst_16 = arith.constant dense<0.000000e+00> : vector<8x32xf32>
    %51 = tpu.matmul %48, %49, %cst_16 {dimension_numbers = #tpu.dot_dimension_numbers<[1], [0], [0], [1], [0, 0, 1, 1], [], []>} : vector<8x64xf32>, vector<64x32xf32>, vector<8x32xf32> -> vector<8x32xf32>
    %52 = vector.broadcast %50 : vector<1x32xf32> to vector<8x32xf32>
    %53 = arith.addf %51, %52 : vector<8x32xf32>
    %c0_17 = arith.constant 0 : index
    %c0_18 = arith.constant 0 : index
    %54 = vector.load %arg2[%c0_17, %c0_18] : memref<8x32xf32, #tpu.memory_space<vmem>>, vector<8x32xf32>
    tpu.vector_store %arg2[%c0_17, %c0_18], %53 {strides = array<i32>} : memref<8x32xf32, #tpu.memory_space<vmem>>, vector<8x32xf32>,
    return
  }
}

</mosaic_0001>

<bundles_post_ra>
// kernel: tpu_custom_call.1
= control target key start
LH: loop header
LB: loop body
LE: loop exit
PB: predicated region body
PF: predicated region fallthrough
CT: control target
= control target key end

     0   :  { %7 = vsyncpa [#allocation3], 0  ;;  %s628_s0 = inlined_call_operand.hbm [shape: f32[8,32], index: 0, kind: input, shape index: {}]   ;;  %s629_s1 = inlined_call_operand.hbm [shape: f32[176,96], index: 1, kind: input, shape index: {}]   ;;  %s630_s2 = inlined_call_operand.hbm [shape: f32[8,32], index: 2, kind: output, shape index: {}]  }
   0x1   :  { %8 = vsyncpa [#allocation6], 0 }
   0x2   :  { %9 = vsyncpa [#allocation4], 0  ;;  %s15_s11 = sshll.u32 %s628_s0, 4  ;;  %s524_s12 = smov [#allocation2]   ;;  %s16_s11 = int_to_ptr.hbm [resolvable:$true] %s15_s11 }
   0x3   :  { %s17_s13 = sshll.u32 %s524_s12, 4  ;;  %s25_s16 = sshll.u32 %s629_s1, 4  ;;  %s18_s13 = int_to_ptr.vmem [resolvable:$true] %s17_s13  ;;  %s26_s16 = int_to_ptr.hbm [resolvable:$true] %s25_s16 }
   0x4   :  { %20 = dma.hbm_to_vmem [thread:$0]  %s16_s11, 128, %s18_s13, [#allocation3]  }
   0x5   :  { %s525_s17 = smov [#allocation5]   ;;  %s526_s19 = smov 128  }
   0x6   :  { %s27_s18 = sshll.u32 %s525_s17, 4  ;;  %s527_s20 = smov 8   ;;  %s28_s18 = int_to_ptr.vmem [resolvable:$true] %s27_s18 }
   0x7   :  { %33 = dma.hbm_to_vmem [thread:$0]  %s26_s16, 2816, %s28_s18, [#allocation6], %s526_s19, %s526_s19, %s527_s20  }
   0x8   :  { %518 = dma.done.wait [#allocation3], 128  }
   0x9   :  { %519 = vsyncadd [#allocation3], 4294967168 }
   0xa   :  { %520 = dma.done.wait [#allocation6], 2816  }
   0xb   :  { %521 = vsyncadd [#allocation6], 4294964480  ;;  %v48_v0 = vld [vmem:[#allocation5 + $0x20] sm:$0xff]  ;;  %v47_v1 = vld [vmem:[#allocation5 + $0x18] sm:$0xff]  ;;  %vm51_vm0 = vcmask 261120   ;;  %s528_s0 = smov 120  }
   0xc   :  { %67 = vmatpush.msra.mxu0 %v48_v0  ;;  %v42_v2 = vld [vmem:[#allocation2] sm:$0xff]  ;;  %v43_v3 = vld [vmem:[#allocation5] sm:$0xff]  ;;  %v46_v4 = vld [vmem:[#allocation5 + $0x10] sm:$0xff]  ;;  %s529_s1 = smov 88   ;;  %s530_s21 = smov 72   ;;  %vm106_vm1 = vcmask 64512  }
   0xd   :  { %v45_v5 = vld [vmem:[#allocation5 + $0x8] sm:$0xff]  ;;  %v44_v6 = vadd.f32 %v43_v3, %v42_v2  ;;  %s531_s22 = smov 112   ;;  %s532_s23 = smov 96   ;;  %v102_v17 = vld [vmem:[#allocation5 + $0x90] sm:$0xff]  ;;  %v103_v21 = vld [vmem:[#allocation5 + $0x98] sm:$0xff] }
   0xe   :  { %68 = vmatpush.msra.mxu0 %v47_v1  ;;  %v428_v7 = vld [vmem:[#allocation5 + $0x28] ss:$0 sm:$0xff]  ;;  %s533_s24 = smov 80   ;;  %s534_s25 = smov 104   ;;  %v104_v27 = vld [vmem:[#allocation5 + $0xa0] sm:$0xff] }
   0xf   :  { %v105_v25 = vld [vmem:[#allocation5 + $0xa8] sm:$0xff]  ;;  %s535_s26 = smov 40   ;;  %s536_s27 = smov 64  }
  0x10   :  { %69 = vmatpush.msra.mxu0 %v46_v4  ;;  %s537_s28 = smov 48   ;;  %s538_s29 = smov 56  }
  0x11   :  { %s539_s30 = smov 16   ;;  %s540_s3 = smov 24  }
  0x12   :  { %70 = vmatpush.msra.mxu0 %v45_v5  ;;  %s541_s4 = smov [#allocation7]   ;;  %s380_s8 = sshll.u32 %s630_s2, 4  ;;  %s381_s8 = int_to_ptr.hbm [resolvable:$true] %s380_s8 }
  0x13   :  { %391 = vmatmul.msk.f32.vlgmr.msra.gmra.mxu0 %vm51_vm0, %v44_v6  ;;  %s378_s5 = sshll.u32 %s541_s4, 4  ;;  %s379_s5 = int_to_ptr.vmem [resolvable:$true] %s378_s5 }
  0x90   :  { %v72_v8 = vpop.f32.mrf.mxu0 }
  0x91   :  { %v565_v9 = vadd.f32 %v428_v7, %v72_v8 }
  0x93   :  { %76 = vrot.lane.b32.xlu2 %v565_v9, %s528_s0  ;;  %84 = vrot.lane.b32.xlu1 %v565_v9, %s529_s1 }
  0x94   :  { %88 = vrot.lane.b32.xlu0 %v565_v9, %s530_s21 }
  0x9b   :  { %78 = vrot.lane.b32.xlu2 %v565_v9, %s531_s22  ;;  %82 = vrot.lane.b32.xlu1 %v565_v9, %s532_s23 }
  0x9c   :  { %86 = vrot.lane.b32.xlu0 %v565_v9, %s533_s24 }
  0xa4   :  { %80 = vrot.lane.b32.xlu0 %v565_v9, %s534_s25 }
  0xed   :  { %v77_v15 = vpop.permute.xlu2 %76 }
  0xf5   :  { %v79_v16 = vpop.permute.xlu2 %78 }
 0x105   :  { %v85_v11 = vpop.permute.xlu1 %84 }
 0x106   :  { %v89_v10 = vpop.permute.xlu0 %88 }
 0x107   :  { %392 = vmatpush.xpose.msk.msra.mxu1 %vm106_vm1, %v89_v10  ;;  %406 = vmatpush.xpose.msk.msra.mxu3 %vm106_vm1, %v89_v10 }
 0x10d   :  { %v83_v13 = vpop.permute.xlu1 %82 }
 0x10e   :  { %v87_v12 = vpop.permute.xlu0 %86 }
 0x10f   :  { %393 = vmatpush.xpose.msk.msra.mxu1 %vm106_vm1, %v87_v12  ;;  %407 = vmatpush.xpose.msk.msra.mxu3 %vm106_vm1, %v87_v12 }
 0x113   :  { %394 = vmatpush.xpose.msk.msra.mxu1 %vm106_vm1, %v85_v11  ;;  %408 = vmatpush.xpose.msk.msra.mxu3 %vm106_vm1, %v85_v11 }
 0x116   :  { %v81_v14 = vpop.permute.xlu0 %80 }
 0x117   :  { %395 = vmatpush.xpose.msk.msra.mxu1 %vm106_vm1, %v83_v13  ;;  %409 = vmatpush.xpose.msk.msra.mxu3 %vm106_vm1, %v83_v13 }
 0x11a   :  { %396 = vmatmul.msk.f32.vlgmr.msra.gmra.mxu1 %vm106_vm1, %v565_v9  ;;  %399 = vmatmul.msk.f32.vlgmr.msra.gmra.mxu3 %vm106_vm1, %v81_v14 }
 0x122   :  { %397 = vmatmul.msk.f32.gmra.mxu1 %vm106_vm1, %v77_v15 }
 0x12a   :  { %398 = vmatmul.msk.f32.gmra.mxu1 %vm106_vm1, %v79_v16 }
 0x197   :  { %v140_v18 = vpop.f32.mrf.mxu1 }
 0x198   :  { %v141_v19 = vadd.f32 %v140_v18, %v102_v17 }
 0x19a   :  { %v152_v20 = vsel %vm51_vm0, %v141_v19, -inf }
 0x19b   :  { %153 = vmax.xlane.f32.xlu1 %v152_v20 }
 0x19d   :  { %v149_v26 = vpop.f32.mrf.mxu3 }
 0x19e   :  { %v150_v28 = vadd.f32 %v149_v26, %v105_v25 }
 0x19f   :  { %v143_v22 = vpop.f32.mrf.mxu1 }
 0x1a0   :  { %v144_v23 = vadd.f32 %v143_v22, %v103_v21  ;;  %v161_v32 = vsel %vm51_vm0, %v150_v28, -inf }
 0x1a2   :  { %v155_v24 = vsel %vm51_vm0, %v144_v23, -inf }
 0x1a3   :  { %156 = vmax.xlane.f32.xlu2 %v155_v24 }
 0x1a7   :  { %v146_v29 = vpop.f32.mrf.mxu1 }
 0x1a8   :  { %v147_v30 = vadd.f32 %v146_v29, %v104_v27 }
 0x1aa   :  { %v158_v31 = vsel %vm51_vm0, %v147_v30, -inf }
 0x1ab   :  { %159 = vmax.xlane.f32.xlu0 %v158_v31  ;;  %162 = vmax.xlane.f32.xlu2 %v161_v32 }
 0x1bf   :  { %99 = vrot.lane.b32.xlu0 %v565_v9, %s535_s26 }
 0x1c7   :  { %90 = vrot.lane.b32.xlu0 %v565_v9, %s536_s27 }
 0x20e   :  { %v154_v33 = vpop.xlane.xlu1 %153 }
 0x20f   :  { %v164_v34 = vsub.f32 %v141_v19, %v154_v33 }
 0x211   :  { %v168_v35 = vmul.f32 1.442695, %v164_v34 }
 0x213   :  { %430 = vpow2.f32 %v168_v35 }
 0x216   :  { %v157_v36 = vpop.xlane.xlu2 %156 }
 0x217   :  { %v165_v37 = vsub.f32 %v144_v23, %v157_v36 }
 0x219   :  { %v594_v38 = vpop.eup %430  ;;  %v170_v39 = vmul.f32 1.442695, %v165_v37 }
 0x21a   :  { %v176_v40 = vsel %vm51_vm0, %v594_v38, 0.0 }
 0x21b   :  { %432 = vpow2.f32 %v170_v39  ;;  %177 = vadd.xlane.f32.xlu1 %v176_v40 }
 0x21e   :  { %v160_v41 = vpop.xlane.xlu0 %159  ;;  %v163_v49 = vpop.xlane.xlu2 %162 }
 0x21f   :  { %v166_v42 = vsub.f32 %v147_v30, %v160_v41  ;;  %v167_v50 = vsub.f32 %v150_v28, %v163_v49  ;;  %v343_v49 = vld [vmem:[#allocation5 + $0x88] sm:$0xff] }
 0x220   :  { %360 = vmatpush.msrb.mxu0 %v343_v49 }
 0x221   :  { %v598_v43 = vpop.eup %432  ;;  %v172_v44 = vmul.f32 1.442695, %v166_v42  ;;  %v174_v51 = vmul.f32 1.442695, %v167_v50  ;;  %v342_v50 = vld [vmem:[#allocation5 + $0x80] sm:$0xff] }
 0x222   :  { %v179_v45 = vsel %vm51_vm0, %v598_v43, 0.0  ;;  %361 = vmatpush.msrb.mxu0 %v342_v50 }
 0x223   :  { %180 = vadd.xlane.f32.xlu2 %v179_v45  ;;  %434 = vpow2.f32 %v172_v44  ;;  %v309_v45 = vld [vmem:[#allocation5 + $0x48] sm:$0xff] }
 0x224   :  { %436 = vpow2.f32 %v174_v51  ;;  %327 = vmatpush.msrb.mxu3 %v309_v45  ;;  %v429_v51 = vld [vmem:[#allocation5 + $0x29] ss:$0 sm:$0xff] }
 0x229   :  { %v602_v46 = vpop.eup %434 }
 0x22a   :  { %v182_v47 = vsel %vm51_vm0, %v602_v46, 0.0  ;;  %v608_v52 = vpop.eup %436 }
 0x22b   :  { %183 = vadd.xlane.f32.xlu2 %v182_v47  ;;  %v185_v53 = vsel %vm51_vm0, %v608_v52, 0.0  ;;  %v307_v47 = vld [vmem:[#allocation5 + $0x38] sm:$0xff] }
 0x231   :  { %v100_v48 = vpop.permute.xlu0 %99 }
 0x232   :  { %272 = vmatpush.msra.mxu2 %v100_v48  ;;  %v306_v48 = vld [vmem:[#allocation5 + $0x30] sm:$0xff] }
 0x234   :  { %96 = vrot.lane.b32.xlu1 %v565_v9, %s537_s28 }
 0x239   :  { %v91_v14 = vpop.permute.xlu0 %90 }
 0x243   :  { %93 = vrot.lane.b32.xlu2 %v565_v9, %s538_s29 }
 0x25e   :  { %186 = vadd.xlane.f32.xlu1 %v185_v53  ;;  %v340_v53 = vld [vmem:[#allocation5 + $0x70] sm:$0xff] }
 0x28e   :  { %v178_v54 = vpop.xlane.xlu1 %177 }
 0x28f   :  { %438 = vrcp.f32 %v178_v54  ;;  %v199_v1 = vand.u32 2147483648, %v178_v54  ;;  %vm193_vm3 = vweird.f32 %v178_v54  ;;  %v197_v2 = vand.u32 2147483647, %v178_v54 }
 0x291   :  { %v200_v5 = vor.u32 1.1754944e-38, %v199_v1  ;;  %vm198_vm5 = vcmp.eq.f32.partialorder %v197_v2, 8.507059e+37 }
 0x295   :  { %v439_v55 = vpop.eup %438 }
 0x296   :  { %v189_v56 = vmul.f32 %v439_v55, %v178_v54  ;;  %v181_v57 = vpop.xlane.xlu2 %180  ;;  %vm194_vm2 = vweird.f32 %v439_v55  ;;  %v339_v54 = vld [vmem:[#allocation5 + $0x68] sm:$0xff] }
 0x297   :  { %440 = vrcp.f32 %v181_v57  ;;  %vm195_vm4 = vmor %vm193_vm3, %vm194_vm2  ;;  %v214_v12 = vand.u32 2147483648, %v181_v57  ;;  %vm208_vm7 = vweird.f32 %v181_v57  ;;  %v212_v16 = vand.u32 2147483647, %v181_v57 }
 0x298   :  { %v190_v58 = vsub.f32 1.0, %v189_v56 }
 0x299   :  { %v215_v19 = vor.u32 1.1754944e-38, %v214_v12  ;;  %vm213_vm9 = vcmp.eq.f32.partialorder %v212_v16, 8.507059e+37 }
 0x29a   :  { %v191_v59 = vmul.f32 %v439_v55, %v190_v58 }
 0x29c   :  { %v192_v0 = vadd.f32 %v439_v55, %v191_v59 }
 0x29d   :  { %v441_v60 = vpop.eup %440 }
 0x29e   :  { %v204_v61 = vmul.f32 %v441_v60, %v181_v57  ;;  %v184_v62 = vpop.xlane.xlu2 %183  ;;  %v196_v4 = vsel %vm195_vm4, %v439_v55, %v192_v0  ;;  %vm209_vm6 = vweird.f32 %v441_v60  ;;  %vm302_vm4 = vcmask 130048  }
 0x29f   :  { %442 = vrcp.f32 %v184_v62  ;;  %v201_v9 = vsel %vm198_vm5, %v200_v5, %v196_v4  ;;  %vm210_vm8 = vmor %vm208_vm7, %vm209_vm6  ;;  %v229_v22 = vand.u32 2147483648, %v184_v62  ;;  %vm223_vm11 = vweird.f32 %v184_v62 }
 0x2a0   :  { %v205_v63 = vsub.f32 1.0, %v204_v61  ;;  %v202_v15 = vmul.f32 %v594_v38, %v201_v9  ;;  %v227_v24 = vand.u32 2147483647, %v184_v62  ;;  %vm304_vm5 = vcmask 195584   ;;  %v338_v61 = vld [vmem:[#allocation5 + $0x60] sm:$0xff] }
 0x2a1   :  { %v230_v26 = vor.u32 1.1754944e-38, %v229_v22  ;;  %vm348_vm6 = vcmask 523264  }
 0x2a2   :  { %v206_v3 = vmul.f32 %v441_v60, %v205_v63  ;;  %vm228_vm13 = vcmp.eq.f32.partialorder %v227_v24, 8.507059e+37  ;;  %v336_v63 = vld [vmem:[#allocation5 + $0x50] sm:$0xff] }
 0x2a4   :  { %v207_v11 = vadd.f32 %v441_v60, %v206_v3 }
 0x2a5   :  { %v443_v6 = vpop.eup %442 }
 0x2a6   :  { %v97_v7 = vpop.permute.xlu1 %96  ;;  %v219_v8 = vmul.f32 %v443_v6, %v184_v62  ;;  %v94_v10 = vpop.permute.xlu2 %93  ;;  %v211_v18 = vsel %vm210_vm8, %v441_v60, %v207_v11  ;;  %vm224_vm10 = vweird.f32 %v443_v6  ;;  %v337_v62 = vld [vmem:[#allocation5 + $0x58] sm:$0xff] }
 0x2a7   :  { %273 = vmatpush.msra.mxu2 %v97_v7  ;;  %v216_v20 = vsel %vm213_vm9, %v215_v19, %v211_v18  ;;  %vm225_vm12 = vmor %vm223_vm11, %vm224_vm10 }
 0x2a8   :  { %v220_v13 = vsub.f32 1.0, %v219_v8  ;;  %v217_v23 = vmul.f32 %v598_v43, %v216_v20 }
 0x2a9   :  { %274 = vmatpush.msra.mxu2 %v94_v10 }
 0x2aa   :  { %v221_v17 = vmul.f32 %v443_v6, %v220_v13 }
 0x2ab   :  { %275 = vmatpush.msra.mxu2 %v91_v14 }
 0x2ac   :  { %400 = vmatmul.msk.f32.vlgmr.msra.gmra.mxu2 %vm51_vm0, %v202_v15  ;;  %v222_v21 = vadd.f32 %v443_v6, %v221_v17 }
 0x2ae   :  { %v226_v25 = vsel %vm225_vm12, %v443_v6, %v222_v21 }
 0x2af   :  { %v231_v27 = vsel %vm228_vm13, %v230_v26, %v226_v25 }
 0x2b0   :  { %v232_v28 = vmul.f32 %v602_v46, %v231_v27  ;;  %v308_v46 = vld [vmem:[#allocation5 + $0x40] sm:$0xff] }
 0x2b1   :  { %328 = vmatpush.msrb.mxu3 %v308_v46 }
 0x2b3   :  { %329 = vmatpush.msrb.mxu3 %v307_v47 }
 0x2b4   :  { %401 = vmatmul.msk.f32.gmra.mxu2 %vm51_vm0, %v217_v23 }
 0x2b5   :  { %330 = vmatpush.msrb.mxu3 %v306_v48 }
 0x2bc   :  { %402 = vmatmul.msk.f32.gmra.mxu2 %vm51_vm0, %v232_v28 }
 0x2d1   :  { %v187_v29 = vpop.xlane.xlu1 %186 }
 0x2d2   :  { %444 = vrcp.f32 %v187_v29  ;;  %v244_v33 = vand.u32 2147483648, %v187_v29  ;;  %v242_v35 = vand.u32 2147483647, %v187_v29  ;;  %vm238_vm15 = vweird.f32 %v187_v29 }
 0x2d4   :  { %v245_v37 = vor.u32 1.1754944e-38, %v244_v33  ;;  %vm243_vm3 = vcmp.eq.f32.partialorder %v242_v35, 8.507059e+37 }
 0x2d8   :  { %v445_v30 = vpop.eup %444 }
 0x2d9   :  { %v234_v31 = vmul.f32 %v445_v30, %v187_v29  ;;  %vm239_vm14 = vweird.f32 %v445_v30 }
 0x2da   :  { %vm240_vm2 = vmor %vm238_vm15, %vm239_vm14 }
 0x2db   :  { %v235_v32 = vsub.f32 1.0, %v234_v31 }
 0x2dd   :  { %v236_v34 = vmul.f32 %v445_v30, %v235_v32 }
 0x2df   :  { %v237_v36 = vadd.f32 %v445_v30, %v236_v34 }
 0x2e1   :  { %v241_v38 = vsel %vm240_vm2, %v445_v30, %v237_v36 }
 0x2e2   :  { %v246_v39 = vsel %vm243_vm3, %v245_v37, %v241_v38 }
 0x2e3   :  { %v247_v40 = vmul.f32 %v608_v52, %v246_v39  ;;  %v341_v52 = vld [vmem:[#allocation5 + $0x78] sm:$0xff] }
 0x2e4   :  { %362 = vmatpush.msrb.mxu0 %v341_v52 }
 0x2e5   :  { %403 = vmatmul.msk.f32.gmra.mxu2 %vm51_vm0, %v247_v40 }
 0x2e6   :  { %363 = vmatpush.msrb.mxu0 %v340_v53 }
 0x2e8   :  { %364 = vmatpush.msrb.mxu0 %v339_v54 }
 0x2ea   :  { %365 = vmatpush.msrb.mxu0 %v338_v61 }
 0x2ec   :  { %366 = vmatpush.msrb.mxu0 %v337_v62 }
 0x2ee   :  { %367 = vmatpush.msrb.mxu0 %v336_v63 }
 0x32f   :  { %v277_v41 = vpop.f32.mrf.mxu2 }
 0x337   :  { %v280_v42 = vpop.f32.mrf.mxu2 }
 0x338   :  { %290 = vrot.lane.b32.xlu0 %v280_v42, %s527_s20 }
 0x33f   :  { %v283_v43 = vpop.f32.mrf.mxu2 }
 0x340   :  { %294 = vrot.lane.b32.xlu0 %v283_v43, %s539_s30 }
 0x348   :  { %345 = vrot.lane.b32.xlu0 %v429_v51, %s536_s27 }
 0x368   :  { %v286_v44 = vpop.f32.mrf.mxu2 }
 0x369   :  { %298 = vrot.lane.b32.xlu2 %v286_v44, %s540_s3 }
 0x3aa   :  { %v291_v55 = vpop.permute.xlu0 %290 }
 0x3ab   :  { %v301_v57 = vsel %vm106_vm1, %v277_v41, %v291_v55 }
 0x3b2   :  { %v295_v56 = vpop.permute.xlu0 %294 }
 0x3b3   :  { %v303_v58 = vsel %vm302_vm4, %v301_v57, %v295_v56 }
 0x3ba   :  { %v346_v3 = vpop.permute.xlu0 %345 }
 0x3c3   :  { %v299_v59 = vpop.permute.xlu2 %298 }
 0x3c4   :  { %v305_v60 = vsel %vm304_vm5, %v303_v58, %v299_v59 }
 0x3c5   :  { %404 = vmatmul.msk.f32.vlgmr.msrb.gmra.mxu3 %vm51_vm0, %v305_v60 }
 0x448   :  { %v332_v0 = vpop.f32.mrf.mxu3 }
 0x449   :  { %v333_v1 = vadd.f32 %v429_v51, %v332_v0 }
 0x44b   :  { %v335_v2 = vmax.f32 %v333_v1, 0.0 }
 0x44d   :  { %405 = vmatmul.msk.f32.vlgmr.msrb.gmra.mxu0 %vm348_vm6, %v335_v2 }
 0x4ca   :  { %v369_v4 = vpop.f32.mrf.mxu0 }
 0x4cb   :  { %v370_v5 = vadd.f32 %v369_v4, %v346_v3 }
 0x4cd   :  { %372 = vst.msk [vmem:[#allocation7] sm:$0xff] %vm51_vm0, %v370_v5 }
 0x4ce   :  { %383 = dma.vmem_to_hbm [thread:$0]  %s379_s5, 128, %s381_s8, [#allocation4]  }
 0x4cf   :  { %522 = dma.done.wait [#allocation4], 128  }
 0x4d0   :  { %523 = vsyncadd [#allocation4], 4294967168 }
 0x4d1   :  { %388 = vsyncpa [#allocation3], 1 }
 0x4d2   :  { %389 = vsyncpa [#allocation6], 1 }
 0x4d3   :  { %390 = vsyncpa [#allocation4], 1 }

</bundles_post_ra>
